<compile_context>
chip_gen: v7x
topology: tpu7x:2x2x1
jax: 0.10.0
libtpu: 0.0.40
codegen_flags: <defaults>
</compile_context>

<pallas_src>
import jax
import jax.numpy as jnp
from jax.experimental import pallas as pl
from jax.experimental.pallas import tpu as pltpu


def _round_up(x, m):
    return (x + m - 1) // m * m


# ---------------------------------------------------------------------------
# Fused kernel: K-tiled backbone matmul + bias/ReLU + all-task FC + CE losses
# ---------------------------------------------------------------------------
def _make_fused_kernel(num_classes, c_pad):
    num_tasks = len(num_classes)

    def kernel(slice_ref,               # scalar-prefetch: [T+1] int32 (SMEM)
               x_ref,                   # [B_pad, tk]     f32
               bbw_ref,                 # [tk, F_pad]     bf16
               bbb_ref,                 # [1, F_pad]      f32
               fcw_ref,                 # [F_pad, T*Cpad] bf16
               fcb_ref,                 # [1, T*Cpad]     f32
               tgt_ref,                 # [B_pad, 1]      int32
               loss_ref,                # [T]             f32 (SMEM output)
               feat_acc):               # [B_pad, F_pad]  f32 (VMEM scratch)
        k = pl.program_id(0)

        @pl.when(k == 0)
        def _init():
            feat_acc[...] = jnp.zeros_like(feat_acc)

        # Backbone partial matmul for this K tile (bf16 on the MXU, f32 accum).
        feat_acc[...] += jnp.dot(x_ref[...].astype(jnp.bfloat16), bbw_ref[...],
                                 preferred_element_type=jnp.float32)

        @pl.when(k == pl.num_programs(0) - 1)
        def _finalize():
            b_pad = feat_acc.shape[0]
            # Bias + ReLU in f32; feature stays resident in VMEM.
            feature = jnp.maximum(feat_acc[...] + bbb_ref[...], 0.0)
            # One lane-dense FC matmul covering every task's (padded) classes.
            logits = jnp.dot(feature.astype(jnp.bfloat16), fcw_ref[...],
                             preferred_element_type=jnp.float32) + fcb_ref[...]
            # Iotas / one-hot built once, shared across tasks.
            col = jax.lax.broadcasted_iota(jnp.int32, (b_pad, c_pad), 1)
            row = jax.lax.broadcasted_iota(jnp.int32, (b_pad, 1), 0)
            onehot = (col == tgt_ref[...]).astype(jnp.float32)
            for t in range(num_tasks):
                lg = logits[:, t * c_pad:(t + 1) * c_pad]
                # Mask padded class columns (finite large-negative: 0*(-1e30)=0).
                lg = jnp.where(col < num_classes[t], lg, -1e30)
                m = jnp.max(lg, axis=-1, keepdims=True)
                s = lg - m
                sum_exp = jnp.sum(jnp.exp(s), axis=-1, keepdims=True)
                tgt_s = jnp.sum(s * onehot, axis=-1, keepdims=True)
                # per-row CE = logsumexp - target_logit; the max term cancels.
                per_row = jnp.log(sum_exp) - tgt_s
                lo = slice_ref[t]
                hi = slice_ref[t + 1]
                rmask = jnp.logical_and(row >= lo, row < hi).astype(jnp.float32)
                loss_ref[t] = jnp.sum(per_row * rmask) / (hi - lo).astype(jnp.float32)

    return kernel


# ---------------------------------------------------------------------------
# One-time weight preparation: pad to lane-dense shapes + cast to bf16 storage
# ---------------------------------------------------------------------------
def prepare_kernel_params(params_raw, num_classes, *, tk=256):
    bb_w, bb_b = params_raw["bb_w"], params_raw["bb_b"]
    d_in, f = bb_w.shape
    t = len(num_classes)
    d_pad = _round_up(d_in, tk)
    f_pad = _round_up(f, 128)   # 256 fills MXU columns better on v6e/v7x if F allows
    c_pad = _round_up(max(num_classes), 128)

    bb_w_p = jnp.zeros((d_pad, f_pad), jnp.bfloat16).at[:d_in, :f].set(
        bb_w.astype(jnp.bfloat16))
    bb_b_p = jnp.zeros((1, f_pad), jnp.float32).at[0, :f].set(bb_b)
    fc_w_p = jnp.zeros((f_pad, t * c_pad), jnp.bfloat16)
    fc_b_p = jnp.zeros((1, t * c_pad), jnp.float32)
    for i, nc in enumerate(num_classes):
        fc_w_p = fc_w_p.at[:f, i * c_pad:i * c_pad + nc].set(
            params_raw["fc_ws"][i].astype(jnp.bfloat16))
        fc_b_p = fc_b_p.at[0, i * c_pad:i * c_pad + nc].set(params_raw["fc_bs"][i])
    return {"bb_w": bb_w_p, "bb_b": bb_b_p, "fc_w": fc_w_p, "fc_b": fc_b_p,
            "tk": tk, "d_in": d_in, "d_pad": d_pad, "f_pad": f_pad, "c_pad": c_pad}


# ---------------------------------------------------------------------------
# Wrapper reproducing MultiTaskWithLoss.forward(input, target, slice_idx)
# ---------------------------------------------------------------------------
def multitask_with_loss(x_nchw, target, slice_idx, kparams, num_classes):
    t = len(num_classes)
    assert len(slice_idx) == t + 1
    b = x_nchw.shape[0]
    assert slice_idx[-1] == b

    tk = kparams["tk"]
    d_in, d_pad = kparams["d_in"], kparams["d_pad"]
    f_pad, c_pad = kparams["f_pad"], kparams["c_pad"]
    tc = t * c_pad
    b_pad = _round_up(b, 8)
    k_tiles = d_pad // tk

    # Row-major flatten (same ordering as torch .view(B, -1)), zero-padded.
    x_flat = x_nchw.reshape(b, -1).astype(jnp.float32)
    x_p = jnp.zeros((b_pad, d_pad), jnp.float32).at[:b, :d_in].set(x_flat)
    tgt_p = jnp.zeros((b_pad, 1), jnp.int32).at[:b, 0].set(target.astype(jnp.int32))
    slice_arr = jnp.asarray(list(slice_idx), dtype=jnp.int32)

    kernel = _make_fused_kernel(tuple(int(c) for c in num_classes), c_pad)

    grid_spec = pltpu.PrefetchScalarGridSpec(
        num_scalar_prefetch=1,                      # slice_idx -> SMEM
        grid=(k_tiles,),                            # backbone reduction axis
        in_specs=[
            pl.BlockSpec((b_pad, tk), lambda k, s: (0, k)),     # x tile
            pl.BlockSpec((tk, f_pad), lambda k, s: (k, 0)),     # backbone W tile
            pl.BlockSpec((1, f_pad), lambda k, s: (0, 0)),      # backbone bias
            pl.BlockSpec((f_pad, tc), lambda k, s: (0, 0)),     # concat FC W
            pl.BlockSpec((1, tc), lambda k, s: (0, 0)),         # concat FC bias
            pl.BlockSpec((b_pad, 1), lambda k, s: (0, 0)),      # targets
        ],
        out_specs=pl.BlockSpec(memory_space=pltpu.MemorySpace.SMEM),
        scratch_shapes=[pltpu.VMEM((b_pad, f_pad), jnp.float32)],
    )

    flops = 2 * b_pad * d_pad * f_pad + 2 * b_pad * f_pad * tc
    bytes_accessed = (x_p.size * 4 + kparams["bb_w"].size * 2
                      + kparams["bb_b"].size * 4 + kparams["fc_w"].size * 2
                      + kparams["fc_b"].size * 4 + tgt_p.size * 4
                      + slice_arr.size * 4 + t * 4)
    cost = pl.CostEstimate(flops=flops, transcendentals=b_pad * tc,
                           bytes_accessed=bytes_accessed)

    losses = pl.pallas_call(
        kernel,
        out_shape=jax.ShapeDtypeStruct((t,), jnp.float32),
        grid_spec=grid_spec,
        compiler_params=pltpu.CompilerParams(
            dimension_semantics=("arbitrary",),
            vmem_limit_bytes=32 * 1024 * 1024),
        cost_estimate=cost,
    )(slice_arr, x_p, kparams["bb_w"], kparams["bb_b"],
      kparams["fc_w"], kparams["fc_b"], tgt_p)
    return [losses[i] for i in range(t)]


# ---------------------------------------------------------------------------
# Pure-JAX reference (same bf16-matmul / f32-accumulate numerics)
# ---------------------------------------------------------------------------
def reference(x_nchw, target, slice_idx, params_raw):
    x_flat = x_nchw.reshape(x_nchw.shape[0], -1).astype(jnp.float32)
    feat = jnp.maximum(
        jnp.dot(x_flat.astype(jnp.bfloat16), params_raw["bb_w"].astype(jnp.bfloat16),
                preferred_element_type=jnp.float32) + params_raw["bb_b"], 0.0)
    out = []
    for k in range(len(params_raw["fc_ws"])):
        lo, hi = slice_idx[k], slice_idx[k + 1]
        logits = jnp.dot(feat[lo:hi].astype(jnp.bfloat16),
                         params_raw["fc_ws"][k].astype(jnp.bfloat16),
                         preferred_element_type=jnp.float32) + params_raw["fc_bs"][k]
        tg = target[lo:hi]
        lse = jax.scipy.special.logsumexp(logits, axis=-1)
        picked = jnp.take_along_axis(logits, tg[:, None], axis=-1)[:, 0]
        out.append(jnp.mean(lse - picked))
    return out


if __name__ == "__main__":
    # Small synthetic config: batch=8, channels=3, spatial=16, feature_dim=32,
    # two tasks with num_classes = [10, 7], slice_idx = [0, 5, 8].
    B, C, H, W = 8, 3, 16, 16
    feature_dim = 32
    num_classes = [10, 7]
    slice_idx = [0, 5, 8]
    D_in = C * H * W

    key = jax.random.PRNGKey(0)
    k_x, k_t, k_bbw, k_bbb, k_fc = jax.random.split(key, 5)

    x = jax.random.normal(k_x, (B, C, H, W), dtype=jnp.float32)

    # Per-task targets drawn within each task's class range.
    tgt_parts = []
    tkeys = jax.random.split(k_t, len(num_classes))
    for k, nc in enumerate(num_classes):
        n = slice_idx[k + 1] - slice_idx[k]
        tgt_parts.append(jax.random.randint(tkeys[k], (n,), 0, nc))
    target = jnp.concatenate(tgt_parts).astype(jnp.int32)

    # Deterministic parameter init (Linear-like scaling), kept in f32 for reference.
    params_raw = {
        "bb_w": jax.random.normal(k_bbw, (D_in, feature_dim), jnp.float32)
                * (1.0 / jnp.sqrt(D_in)),
        "bb_b": jax.random.normal(k_bbb, (feature_dim,), jnp.float32) * 0.01,
        "fc_ws": [], "fc_bs": [],
    }
    fkeys = jax.random.split(k_fc, 2 * len(num_classes))
    for k, nc in enumerate(num_classes):
        params_raw["fc_ws"].append(
            jax.random.normal(fkeys[2 * k], (feature_dim, nc), jnp.float32)
            * (1.0 / jnp.sqrt(feature_dim)))
        params_raw["fc_bs"].append(
            jax.random.normal(fkeys[2 * k + 1], (nc,), jnp.float32) * 0.01)

    kparams = prepare_kernel_params(params_raw, num_classes, tk=256)

    losses = multitask_with_loss(x, target, slice_idx, kparams, num_classes)
    losses = [jax.block_until_ready(l) for l in losses]

    ref = reference(x, target, slice_idx, params_raw)
    for l, r in zip(losses, ref):
        assert jnp.allclose(l, r, rtol=1e-2, atol=1e-2), (float(l), float(r))

    print("KERNEL_OK")
</pallas_src>

<mosaic_0001>
module attributes {stable_mosaic.version = 11 : i64} {
  func.func @kernel(%arg0: i32, %arg1: memref<3xi32, #tpu.memory_space<smem>>, %arg2: memref<8x256xf32, #tpu.memory_space<vmem>>, %arg3: memref<256x128xbf16, #tpu.memory_space<vmem>>, %arg4: memref<1x128xf32, #tpu.memory_space<vmem>>, %arg5: memref<128x256xbf16, #tpu.memory_space<vmem>>, %arg6: memref<1x256xf32, #tpu.memory_space<vmem>>, %arg7: memref<8x1xi32, #tpu.memory_space<vmem>>, %arg8: memref<2xf32, #tpu.memory_space<smem>>, %arg9: memref<8x128xf32, #tpu.memory_space<vmem>>) attributes {dimension_semantics = [#tpu.dimension_semantics<arbitrary>], iteration_bounds = array<i64: 3>, scalar_prefetch = 1 : i64, scratch_operands = 1 : i64, tpu.core_type = #tpu.core_type<tc>, window_params = [{transform_indices = @transform_0, window_bounds = array<i64: 8, 256>}, {transform_indices = @transform_1, window_bounds = array<i64: 256, 128>}, {pipeline_mode = #tpu.pipeline_mode<synchronous>, transform_indices = @transform_2, window_bounds = array<i64: 1, 128>}, {pipeline_mode = #tpu.pipeline_mode<synchronous>, transform_indices = @transform_3, window_bounds = array<i64: 128, 256>}, {pipeline_mode = #tpu.pipeline_mode<synchronous>, transform_indices = @transform_4, window_bounds = array<i64: 1, 256>}, {pipeline_mode = #tpu.pipeline_mode<synchronous>, transform_indices = @transform_5, window_bounds = array<i64: 8, 1>}, {transform_indices = @transform_6, window_bounds = array<i64: 2>}]} {
    %c0_i32 = arith.constant 0 : i32
    %0 = arith.cmpi eq, %arg0, %c0_i32 : i32
    %1 = arith.extui %0 : i1 to i32
    %c0_i32_0 = arith.constant 0 : i32
    %2 = arith.cmpi ne, %1, %c0_i32_0 : i32
    scf.if %2 {
      %cst_9 = arith.constant 0.000000e+00 : f32
      %13 = vector.broadcast %cst_9 : f32 to vector<8x128xf32>
      %c0_10 = arith.constant 0 : index
      %c0_11 = arith.constant 0 : index
      %14 = vector.load %arg9[%c0_10, %c0_11] : memref<8x128xf32, #tpu.memory_space<vmem>>, vector<8x128xf32>
      tpu.vector_store %arg9[%c0_10, %c0_11], %13 {strides = array<i32>} : memref<8x128xf32, #tpu.memory_space<vmem>>, vector<8x128xf32>,
    } else {
    }
    %c0 = arith.constant 0 : index
    %c0_1 = arith.constant 0 : index
    %3 = vector.load %arg9[%c0, %c0_1] : memref<8x128xf32, #tpu.memory_space<vmem>>, vector<8x128xf32>
    %c0_2 = arith.constant 0 : index
    %c0_3 = arith.constant 0 : index
    %4 = vector.load %arg2[%c0_2, %c0_3] : memref<8x256xf32, #tpu.memory_space<vmem>>, vector<8x256xf32>
    %5 = arith.truncf %4 : vector<8x256xf32> to vector<8x256xbf16>
    %c0_4 = arith.constant 0 : index
    %c0_5 = arith.constant 0 : index
    %6 = vector.load %arg3[%c0_4, %c0_5] : memref<256x128xbf16, #tpu.memory_space<vmem>>, vector<256x128xbf16>
    %cst = arith.constant dense<0.000000e+00> : vector<8x128xf32>
    %7 = tpu.matmul %5, %6, %cst {dimension_numbers = #tpu.dot_dimension_numbers<[1], [0], [0], [1], [0, 0, 1, 1], [], []>} : vector<8x256xbf16>, vector<256x128xbf16>, vector<8x128xf32> -> vector<8x128xf32>
    %8 = arith.addf %3, %7 : vector<8x128xf32>
    %c0_6 = arith.constant 0 : index
    %c0_7 = arith.constant 0 : index
    %9 = vector.load %arg9[%c0_6, %c0_7] : memref<8x128xf32, #tpu.memory_space<vmem>>, vector<8x128xf32>
    tpu.vector_store %arg9[%c0_6, %c0_7], %8 {strides = array<i32>} : memref<8x128xf32, #tpu.memory_space<vmem>>, vector<8x128xf32>,
    %c2_i32 = arith.constant 2 : i32
    %10 = arith.cmpi eq, %arg0, %c2_i32 : i32
    %11 = arith.extui %10 : i1 to i32
    %c0_i32_8 = arith.constant 0 : i32
    %12 = arith.cmpi ne, %11, %c0_i32_8 : i32
    scf.if %12 {
      %c0_9 = arith.constant 0 : index
      %c0_10 = arith.constant 0 : index
      %13 = vector.load %arg9[%c0_9, %c0_10] : memref<8x128xf32, #tpu.memory_space<vmem>>, vector<8x128xf32>
      %c0_11 = arith.constant 0 : index
      %c0_12 = arith.constant 0 : index
      %14 = vector.load %arg4[%c0_11, %c0_12] : memref<1x128xf32, #tpu.memory_space<vmem>>, vector<1x128xf32>
      %15 = vector.broadcast %14 : vector<1x128xf32> to vector<8x128xf32>
      %16 = arith.addf %13, %15 : vector<8x128xf32>
      %cst_13 = arith.constant 0.000000e+00 : f32
      %17 = vector.broadcast %cst_13 : f32 to vector<8x128xf32>
      %18 = arith.maximumf %16, %17 : vector<8x128xf32>
      %19 = arith.truncf %18 : vector<8x128xf32> to vector<8x128xbf16>
      %c0_14 = arith.constant 0 : index
      %c0_15 = arith.constant 0 : index
      %20 = vector.load %arg5[%c0_14, %c0_15] : memref<128x256xbf16, #tpu.memory_space<vmem>>, vector<128x256xbf16>
      %cst_16 = arith.constant dense<0.000000e+00> : vector<8x256xf32>
      %21 = tpu.matmul %19, %20, %cst_16 {dimension_numbers = #tpu.dot_dimension_numbers<[1], [0], [0], [1], [0, 0, 1, 1], [], []>} : vector<8x128xbf16>, vector<128x256xbf16>, vector<8x256xf32> -> vector<8x256xf32>
      %c0_17 = arith.constant 0 : index
      %c0_18 = arith.constant 0 : index
      %22 = vector.load %arg6[%c0_17, %c0_18] : memref<1x256xf32, #tpu.memory_space<vmem>>, vector<1x256xf32>
      %23 = vector.broadcast %22 : vector<1x256xf32> to vector<8x256xf32>
      %24 = arith.addf %21, %23 : vector<8x256xf32>
      %25 = tpu.iota {dimensions = array<i32: 1>} : vector<8x128xi32>
      %26 = tpu.iota {dimensions = array<i32: 0>} : vector<8x1xi32>
      %c0_19 = arith.constant 0 : index
      %c0_20 = arith.constant 0 : index
      %27 = vector.load %arg7[%c0_19, %c0_20] : memref<8x1xi32, #tpu.memory_space<vmem>>, vector<8x1xi32>
      %28 = vector.broadcast %27 : vector<8x1xi32> to vector<8x128xi32>
      %29 = arith.cmpi eq, %25, %28 : vector<8x128xi32>
      %30 = arith.extui %29 : vector<8x128xi1> to vector<8x128xi32>
      %31 = arith.sitofp %30 : vector<8x128xi32> to vector<8x128xf32>
      %32 = vector.extract_strided_slice %24 {offsets = [0, 0], sizes = [8, 128], strides = [1, 1]} : vector<8x256xf32> to vector<8x128xf32>
      %c10_i32 = arith.constant 10 : i32
      %33 = vector.broadcast %c10_i32 : i32 to vector<8x128xi32>
      %34 = arith.cmpi slt, %25, %33 : vector<8x128xi32>
      %cst_21 = arith.constant -1.000000e+30 : f32
      %35 = vector.broadcast %cst_21 : f32 to vector<8x128xf32>
      %36 = arith.select %34, %32, %35 : vector<8x128xi1>, vector<8x128xf32>
      %cst_22 = arith.constant dense<0xFF800000> : vector<8xf32>
      %37 = vector.multi_reduction <maximumf>, %36, %cst_22 [1] : vector<8x128xf32> to vector<8xf32>
      %38 = vector.shape_cast %37 : vector<8xf32> to vector<8x1xf32>
      %39 = vector.broadcast %38 : vector<8x1xf32> to vector<8x128xf32>
      %40 = arith.subf %36, %39 : vector<8x128xf32>
      %41 = math.exp %40 : vector<8x128xf32>
      %cst_23 = arith.constant dense<0.000000e+00> : vector<8xf32>
      %42 = vector.multi_reduction <add>, %41, %cst_23 [1] : vector<8x128xf32> to vector<8xf32>
      %43 = vector.shape_cast %42 : vector<8xf32> to vector<8x1xf32>
      %44 = arith.mulf %40, %31 : vector<8x128xf32>
      %cst_24 = arith.constant dense<0.000000e+00> : vector<8xf32>
      %45 = vector.multi_reduction <add>, %44, %cst_24 [1] : vector<8x128xf32> to vector<8xf32>
      %46 = vector.shape_cast %45 : vector<8xf32> to vector<8x1xf32>
      %47 = math.log %43 : vector<8x1xf32>
      %48 = arith.subf %47, %46 : vector<8x1xf32>
      %c0_25 = arith.constant 0 : index
      %49 = memref.load %arg1[%c0_25] : memref<3xi32, #tpu.memory_space<smem>>
      %c1 = arith.constant 1 : index
      %50 = memref.load %arg1[%c1] : memref<3xi32, #tpu.memory_space<smem>>
      %51 = vector.broadcast %49 : i32 to vector<8x1xi32>
      %52 = arith.cmpi sge, %26, %51 : vector<8x1xi32>
      %53 = vector.broadcast %50 : i32 to vector<8x1xi32>
      %54 = arith.cmpi slt, %26, %53 : vector<8x1xi32>
      %55 = arith.andi %52, %54 : vector<8x1xi1>
      %56 = arith.extui %55 : vector<8x1xi1> to vector<8x1xi32>
      %57 = arith.sitofp %56 : vector<8x1xi32> to vector<8x1xf32>
      %58 = arith.mulf %48, %57 : vector<8x1xf32>
      %59 = vector.shape_cast %58 : vector<8x1xf32> to vector<1x8x1xf32>
      %cst_26 = arith.constant dense<0.000000e+00> : vector<1xf32>
      %60 = vector.multi_reduction <add>, %59, %cst_26 [1, 2] : vector<1x8x1xf32> to vector<1xf32>
      %61 = vector.shape_cast %60 : vector<1xf32> to vector<1x1x1xf32>
      %62 = vector.extract %61[0, 0, 0] : f32 from vector<1x1x1xf32>
      %63 = arith.subi %50, %49 : i32
      %64 = arith.sitofp %63 : i32 to f32
      %65 = arith.divf %62, %64 : f32
      %c0_27 = arith.constant 0 : index
      %66 = memref.load %arg8[%c0_27] : memref<2xf32, #tpu.memory_space<smem>>
      memref.store %65, %arg8[%c0_27] : memref<2xf32, #tpu.memory_space<smem>>
      %67 = vector.extract_strided_slice %24 {offsets = [0, 128], sizes = [8, 128], strides = [1, 1]} : vector<8x256xf32> to vector<8x128xf32>
      %c7_i32 = arith.constant 7 : i32
      %68 = vector.broadcast %c7_i32 : i32 to vector<8x128xi32>
      %69 = arith.cmpi slt, %25, %68 : vector<8x128xi32>
      %cst_28 = arith.constant -1.000000e+30 : f32
      %70 = vector.broadcast %cst_28 : f32 to vector<8x128xf32>
      %71 = arith.select %69, %67, %70 : vector<8x128xi1>, vector<8x128xf32>
      %cst_29 = arith.constant dense<0xFF800000> : vector<8xf32>
      %72 = vector.multi_reduction <maximumf>, %71, %cst_29 [1] : vector<8x128xf32> to vector<8xf32>
      %73 = vector.shape_cast %72 : vector<8xf32> to vector<8x1xf32>
      %74 = vector.broadcast %73 : vector<8x1xf32> to vector<8x128xf32>
      %75 = arith.subf %71, %74 : vector<8x128xf32>
      %76 = math.exp %75 : vector<8x128xf32>
      %cst_30 = arith.constant dense<0.000000e+00> : vector<8xf32>
      %77 = vector.multi_reduction <add>, %76, %cst_30 [1] : vector<8x128xf32> to vector<8xf32>
      %78 = vector.shape_cast %77 : vector<8xf32> to vector<8x1xf32>
      %79 = arith.mulf %75, %31 : vector<8x128xf32>
      %cst_31 = arith.constant dense<0.000000e+00> : vector<8xf32>
      %80 = vector.multi_reduction <add>, %79, %cst_31 [1] : vector<8x128xf32> to vector<8xf32>
      %81 = vector.shape_cast %80 : vector<8xf32> to vector<8x1xf32>
      %82 = math.log %78 : vector<8x1xf32>
      %83 = arith.subf %82, %81 : vector<8x1xf32>
      %c1_32 = arith.constant 1 : index
      %84 = memref.load %arg1[%c1_32] : memref<3xi32, #tpu.memory_space<smem>>
      %c2 = arith.constant 2 : index
      %85 = memref.load %arg1[%c2] : memref<3xi32, #tpu.memory_space<smem>>
      %86 = vector.broadcast %84 : i32 to vector<8x1xi32>
      %87 = arith.cmpi sge, %26, %86 : vector<8x1xi32>
      %88 = vector.broadcast %85 : i32 to vector<8x1xi32>
      %89 = arith.cmpi slt, %26, %88 : vector<8x1xi32>
      %90 = arith.andi %87, %89 : vector<8x1xi1>
      %91 = arith.extui %90 : vector<8x1xi1> to vector<8x1xi32>
      %92 = arith.sitofp %91 : vector<8x1xi32> to vector<8x1xf32>
      %93 = arith.mulf %83, %92 : vector<8x1xf32>
      %94 = vector.shape_cast %93 : vector<8x1xf32> to vector<1x8x1xf32>
      %cst_33 = arith.constant dense<0.000000e+00> : vector<1xf32>
      %95 = vector.multi_reduction <add>, %94, %cst_33 [1, 2] : vector<1x8x1xf32> to vector<1xf32>
      %96 = vector.shape_cast %95 : vector<1xf32> to vector<1x1x1xf32>
      %97 = vector.extract %96[0, 0, 0] : f32 from vector<1x1x1xf32>
      %98 = arith.subi %85, %84 : i32
      %99 = arith.sitofp %98 : i32 to f32
      %100 = arith.divf %97, %99 : f32
      %c1_34 = arith.constant 1 : index
      %101 = memref.load %arg8[%c1_34] : memref<2xf32, #tpu.memory_space<smem>>
      memref.store %100, %arg8[%c1_34] : memref<2xf32, #tpu.memory_space<smem>>
    } else {
    }
    return
  }
  func.func @transform_0(%arg0: i32, %arg1: memref<3xi32, #tpu.memory_space<smem>>) -> (i32, i32) {
    %c0_i32 = arith.constant 0 : i32
    %c0_i32_0 = arith.constant 0 : i32
    return %c0_i32, %arg0 : i32, i32
  }
  func.func @transform_1(%arg0: i32, %arg1: memref<3xi32, #tpu.memory_space<smem>>) -> (i32, i32) {
    %c0_i32 = arith.constant 0 : i32
    %c0_i32_0 = arith.constant 0 : i32
    return %arg0, %c0_i32 : i32, i32
  }
  func.func @transform_2(%arg0: i32, %arg1: memref<3xi32, #tpu.memory_space<smem>>) -> (i32, i32) {
    %c0_i32 = arith.constant 0 : i32
    %c0_i32_0 = arith.constant 0 : i32
    %c0_i32_1 = arith.constant 0 : i32
    return %c0_i32, %c0_i32_0 : i32, i32
  }
  func.func @transform_3(%arg0: i32, %arg1: memref<3xi32, #tpu.memory_space<smem>>) -> (i32, i32) {
    %c0_i32 = arith.constant 0 : i32
    %c0_i32_0 = arith.constant 0 : i32
    %c0_i32_1 = arith.constant 0 : i32
    return %c0_i32, %c0_i32_0 : i32, i32
  }
  func.func @transform_4(%arg0: i32, %arg1: memref<3xi32, #tpu.memory_space<smem>>) -> (i32, i32) {
    %c0_i32 = arith.constant 0 : i32
    %c0_i32_0 = arith.constant 0 : i32
    %c0_i32_1 = arith.constant 0 : i32
    return %c0_i32, %c0_i32_0 : i32, i32
  }
  func.func @transform_5(%arg0: i32, %arg1: memref<3xi32, #tpu.memory_space<smem>>) -> (i32, i32) {
    %c0_i32 = arith.constant 0 : i32
    %c0_i32_0 = arith.constant 0 : i32
    %c0_i32_1 = arith.constant 0 : i32
    return %c0_i32, %c0_i32_0 : i32, i32
  }
  func.func @transform_6(%arg0: i32, %arg1: memref<3xi32, #tpu.memory_space<smem>>) -> i32 {
    %c0_i32 = arith.constant 0 : i32
    %c0_i32_0 = arith.constant 0 : i32
    return %c0_i32 : i32
  }
}

</mosaic_0001>

<bundles_post_ra>
// kernel: tpu_custom_call.1
= control target key start
LH: loop header
LB: loop body
LE: loop exit
PB: predicated region body
PF: predicated region fallthrough
CT: control target
= control target key end

     0   :  { %s1526_s0 = inlined_call_operand.vmem [shape: s32[3], index: 0, kind: input, shape index: {}]   ;;  %s1527_s1 = inlined_call_operand.hbm [shape: f32[8,768], index: 1, kind: input, shape index: {}]   ;;  %s1528_s2 = inlined_call_operand.hbm [shape: bf16[768,128], index: 2, kind: input, shape index: {}]   ;;  %s1529_s3 = inlined_call_operand.vmem [shape: f32[1,128], index: 3, kind: input, shape index: {}]   ;;  %s1530_s4 = inlined_call_operand.hbm [shape: bf16[128,256], index: 4, kind: input, shape index: {}]   ;;  %s1531_s5 = inlined_call_operand.vmem [shape: f32[1,256], index: 5, kind: input, shape index: {}]   ;;  %s1532_s6 = inlined_call_operand.vmem [shape: s32[8,1], index: 6, kind: input, shape index: {}]   ;;  %s1533_s7 = inlined_call_operand.hbm [shape: f32[2], index: 7, kind: output, shape index: {}]  }
   0x1   :  { %s12_s26 = sshll.u32 %s1526_s0, 4  ;;  %s13_s26 = int_to_ptr.vmem [resolvable:$true] %s12_s26 }
   0x2   :  { %s1065_s27 = scalar_lea.vmem %s13_s26, 16  ;;  %p1070_p1 = scmp.lt.s32.totalorder %s13_s26, %s13_s26 }
   0x3   :  { %p1066_p0 = scmp.ne.s32.totalorder %s13_s26, %s1065_s27  ;;  %p1071_p2 = scmp.lt.s32.totalorder %s1065_s27, %s1065_s27 }
   0x5   :  { %p1072_p3 = por %p1071_p2, %p1070_p1 }
   0x7   :  { %p1073_p4 = pnand %p1072_p3, %p1066_p0 }
   0x9   :  { %1076 = shalt.err (!%p1073_p4)  }
   0xa   :  { %s1227_s28 = smov [#allocation4]  }
   0xb   :  { %15 = dma.vmem_to_smem %s13_s26, 16, %s1227_s28, [#allocation3] }
   0xc   :  { %1193 = dma.done.wait [#allocation3], 16 }
   0xd   :  { %1194 = vsyncadd [#allocation3], 4294967280 }
   0xe   :  { %17 = sfence }
   0xf   :  { %18 = vsyncpa [#allocation6], 0 }
  0x10   :  { %20 = vsyncpa [#allocation6 + $0x1], 0 }
  0x11   :  { %21 = vsyncpa [#allocation9], 0 }
  0x12   :  { %23 = vsyncpa [#allocation9 + $0x1], 0 }
  0x13   :  { %24 = vsyncpa [#allocation7], 0  ;;  %s1282_s29 = smov 0   ;;  %s1284_s0 = smov 0  }
  0x14   :  { %s1286_s30 = smov 0   ;;  %s1288_s8 = smov 0  }
  0x15 LB: > { %s1301_s9 = sadd.s32 4294967295, %s1225_s8   ;;  %p50_p5 = scmp.ne.s32.totalorder %s1217_s0, %s1213_s29  ;;  %s1225_s8 = sphi %s1288_s8, %s1549_s8   ;;  %s1221_s30 = sphi %s1286_s30, %s1548_s30   ;;  %s1217_s0 = sphi %s1284_s0, %s1547_s0   ;;  %s1213_s29 = sphi %s1282_s29, %s1546_s29  }
  0x16   : > { %p1534_p6 = scmp.eq.s32.totalorder %s1301_s9, 0  ;;  %p851_p7 = scmp.ge.s32.totalorder %s1225_s8, 1 }
  0x17   : > { %p192_p8 = scmp.lt.s32.totalorder %s1225_s8, 4  ;;  %s1228_s12 = smov [#allocation10]  }
  0x18   : > { %p1310_p10 = por %p1534_p6, %p50_p5  ;;  %s207_s13 = sshll.u32 %s1228_s12, 4  ;;  %s208_s13 = int_to_ptr.vmem [resolvable:$true] %s207_s13 }
  0x19   : > { %p1314_p11 = pnand %p851_p7, %p192_p8  ;;  %s1327_s15 = sadd.s32 1, %s1225_s8  }
  0x1a   : > { %s1537_s10 = scalar_select %p1310_p10, 1, 0 }
  0x1b   : > { %s1538_s11 = scalar_select %p1314_p11, 1, 0 }
  0x1c   : > { %p953_p12 = pneg %p1314_p11  ;;  %s37_s16 = sadd.s32 1, %s1221_s30 }
  0x1d   : > { %s34_s17 = ssub.s32 %s1225_s8, %s1327_s15  ;;  %s1077_s20 = scalar_lea.hbm %s1530_s4, 2048 }
  0x1e   : > { %p1322_p13 = pnand %p953_p12, %p1534_p6  ;;  %p1078_p0 = scmp.ne.s32.totalorder %s1530_s4, %s1077_s20 }
  0x1f   : > { %p1084_p4 = scmp.lt.u32.totalorder %s1077_s20, %s1530_s4 }
  0x20   : > { %p1079_p1 = pneg %p1322_p13 }
  0x22   : > { %p1080_p2 = pnand %p1079_p1, %p1078_p0 }
  0x24   : > { %p1081_p3 = pneg %p1080_p2 }
  0x26   : > { %p1086_p5 = pnand %p1084_p4, %p1081_p3 }
  0x28   : > { %1089 = shalt.err (!%p1086_p5)
}
  0x29   : > { %s1090_s25 = scalar_lea.vmem %s208_s13, 2048  ;;  %p1098_p9 = scmp.lt.s32.totalorder %s208_s13, %s208_s13 }
  0x2a   : > { %p1091_p7 = scmp.ne.s32.totalorder %s208_s13, %s1090_s25  ;;  %p1099_p6 = scmp.lt.s32.totalorder %s1090_s25, %s1090_s25 }
  0x2c   : > { %p1093_p8 = pnand %p1091_p7, %p1079_p1  ;;  %p1100_p10 = por %p1099_p6, %p1098_p9 }
  0x2e   : > { %p1094_p12 = pneg %p1093_p8 }
  0x30   : > { %p1101_p11 = pnand %p1100_p10, %p1094_p12 }
  0x32   : > { %1104 = shalt.err (!%p1101_p11)
}
  0x33   : > { %s1229_s26 = smov 128   ;;  %s1230_s27 = smov 8  }
  0x34   : > { %956 = dma.hbm_to_vmem [thread:$0]  (!%p1322_p13), %s1530_s4, 2048, %s208_s13, [#allocation9], %s1229_s26, %s1229_s26, %s1230_s27  }
  0x35   : > { %p35_p0 = scmp.eq.s32.totalorder %s34_s17, 0  ;;  %p44_p6 = scmp.ne.s32.totalorder %s1221_s30, %s1217_s0 }
  0x36   : > { %p45_p9 = scmp.eq.s32.totalorder %s1225_s8, 0  ;;  %p965_p10 = scmp.lt.s32.totalorder %s1225_s8, 3 }
  0x37   : > { %s1353_s12 = scalar_select %p35_p0, %s1221_s30, %s37_s16  }
  0x38   : > { %p46_p11 = por %p45_p9, %p44_p6  ;;  %s1356_s18 = sand.u32 1, %s1221_s30  }
  0x39   : > { %s854_s19 = sshll.u32 %s1356_s18, 4  ;;  %s909_s20 = sshll.u32 %s1225_s8, 8 }
  0x3a   : > { %s1363_s22 = scalar_lea.hbm %s1527_s1, %s909_s20  ;;  %s231_s13 = scalar_lea.vmem [#allocation5], %s854_s19 }
  0x3b   : > { %s239_s16 = sshll.u32 %s231_s13, 4  ;;  %p1367_p13 = pnand %p965_p10, %p46_p11  ;;  %s1365_s16 = int_to_ptr.vmem [resolvable:$true] %s239_s16 }
  0x3c   : > { %s857_s23 = sshll.u32 %s1356_s18, 7  ;;  %s246_s24 = sand.u32 1, %s1225_s8  }
  0x3d   : > { %s228_s25 = scalar_lea.sflag [#allocation6], %s1356_s18  ;;  %s1105_s26 = scalar_lea.hbm %s1363_s22, 256 }
  0x3e   : > { %p1106_p1 = scmp.ne.s32.totalorder %s1363_s22, %s1105_s26  ;;  %p1107_p2 = pneg %p1367_p13 }
  0x3f   : > { %s1110_s29 = scalar_lea.hbm %s1527_s1, 768  ;;  %p1111_p5 = scmp.lt.u32.totalorder %s1363_s22, %s1527_s1 }
  0x40   : > { %p1108_p3 = pnand %p1107_p2, %p1106_p1  ;;  %p1112_p7 = scmp.lt.u32.totalorder %s1110_s29, %s1105_s26 }
  0x41   : > { %p1114_p12 = scmp.lt.u32.totalorder %s1105_s26, %s1363_s22 }
  0x42   : > { %p1109_p4 = pneg %p1108_p3  ;;  %p1113_p8 = por %p1112_p7, %p1111_p5 }
  0x44   : > { %p1115_p0 = por %p1114_p12, %p1113_p8 }
  0x46   : > { %p1116_p6 = pnand %p1115_p0, %p1109_p4 }
  0x48   : > { %1119 = shalt.err (!%p1116_p6)
}
  0x49   : > { %s1120_s14 = scalar_lea.vmem %s1365_s16, 256  ;;  %s1231_s21 = smov [#allocation5]  }
  0x4a   : > { %p1121_p9 = scmp.ne.s32.totalorder %s1365_s16, %s1120_s14  ;;  %s1125_s13 = sshll.u32 %s1231_s21, 4  ;;  %s1126_s13 = int_to_ptr.vmem [resolvable:$false] %s1125_s13 }
  0x4b   : > { %s1127_s27 = scalar_lea.vmem %s1126_s13, 512  ;;  %p1128_p1 = scmp.lt.s32.totalorder %s1365_s16, %s1126_s13 }
  0x4c   : > { %p1123_p10 = pnand %p1121_p9, %p1107_p2  ;;  %p1129_p3 = scmp.lt.s32.totalorder %s1127_s27, %s1120_s14 }
  0x4e   : > { %p1124_p11 = pneg %p1123_p10  ;;  %p1130_p5 = por %p1129_p3, %p1128_p1 }
  0x50   : > { %p1131_p7 = pnand %p1130_p5, %p1124_p11 }
  0x52   : > { %1134 = shalt.err (!%p1131_p7)
}
  0x53   : > { %960 = dma.hbm_to_vmem [thread:$0]  (!%p1367_p13), %s1363_s22, 256, %s1365_s16, %s228_s25  }
  0x54   : > { %s250_s26 = scalar_lea.vmem [#allocation8], %s857_s23  ;;  %s910_s29 = sshll.u32 %s1225_s8, 11 }
  0x55   : > { %s257_s28 = sshll.u32 %s250_s26, 4  ;;  %s1407_s14 = scalar_lea.hbm %s1528_s2, %s910_s29  ;;  %s1401_s28 = int_to_ptr.vmem [resolvable:$true] %s257_s28 }
  0x56   : > { %s1411_s21 = scalar_lea.sflag [#allocation9], %s246_s24  ;;  %s1135_s13 = scalar_lea.hbm %s1407_s14, 2048 }
  0x57   : > { %p1136_p4 = scmp.ne.s32.totalorder %s1407_s14, %s1135_s13  ;;  %s1140_s16 = scalar_lea.hbm %s1528_s2, 6144 }
  0x58   : > { %p1141_p0 = scmp.lt.u32.totalorder %s1407_s14, %s1528_s2  ;;  %p1142_p6 = scmp.lt.u32.totalorder %s1140_s16, %s1135_s13 }
  0x59   : > { %p1138_p8 = pnand %p1136_p4, %p1107_p2  ;;  %p1144_p10 = scmp.lt.u32.totalorder %s1135_s13, %s1407_s14 }
  0x5a   : > { %p1143_p9 = por %p1142_p6, %p1141_p0 }
  0x5b   : > { %p1139_p12 = pneg %p1138_p8 }
  0x5c   : > { %p1145_p11 = por %p1144_p10, %p1143_p9 }
  0x5e   : > { %p1146_p1 = pnand %p1145_p11, %p1139_p12 }
  0x60   : > { %1149 = shalt.err (!%p1146_p1)
}
  0x61   : > { %s1150_s8 = scalar_lea.vmem %s1401_s28, 2048  ;;  %s1232_s24 = smov [#allocation8]  }
  0x62   : > { %p1151_p3 = scmp.ne.s32.totalorder %s1401_s28, %s1150_s8  ;;  %s1155_s27 = sshll.u32 %s1232_s24, 4  ;;  %s1156_s27 = int_to_ptr.vmem [resolvable:$false] %s1155_s27 }
  0x63   : > { %s1157_s26 = scalar_lea.vmem %s1156_s27, 4096  ;;  %p1158_p4 = scmp.lt.s32.totalorder %s1401_s28, %s1156_s27 }
  0x64   : > { %p1153_p5 = pnand %p1151_p3, %p1107_p2  ;;  %p1159_p8 = scmp.lt.s32.totalorder %s1157_s26, %s1150_s8 }
  0x66   : > { %p1154_p7 = pneg %p1153_p5  ;;  %p1160_p0 = por %p1159_p8, %p1158_p4 }
  0x68   : > { %p1161_p6 = pnand %p1160_p0, %p1154_p7 }
  0x6a   : > { %1164 = shalt.err (!%p1161_p6)
}
  0x6b   : > { %s1233_s29 = smov 64   ;;  %s1234_s19 = smov 4  }
  0x6c   : > { %963 = dma.hbm_to_vmem [thread:$0]  (!%p1367_p13), %s1407_s14, 2048, %s1401_s28, %s1411_s21, %s1233_s29, %s1233_s29, %s1234_s19  }
  0x6d   : > { %p1541_p2 = scmp.ne.s32.totalorder %s1538_s11, 0 }
  0x6e   : > { %s271_s20 = sand.u32 (!%p1541_p2), 1, %s1217_s0   ;;  %p1542_p12 = scmp.ne.s32.totalorder (!%p1541_p2), %s1537_s10, 0 }
  0x6f   : > { %269 = sbr.rel (%p1541_p2) target bundleno = 1157 (0x485), region = 44  ;;  %s861_s13 = sshll.u32 (!%p1541_p2), %s271_s20, 4 }
  0x70   : > { %s272_s18 = scalar_lea.sflag (!%p1541_p2), [#allocation6], %s271_s20  ;;  %s1440_s22 = scalar_lea.vmem (!%p1541_p2), [#allocation5], %s861_s13 }
  0x76   : > { %1196 = dma.done.wait (%p1542_p12), %s272_s18, 256  }
  0x77   : > { %1198 = vsyncadd (%p1542_p12), %s272_s18, 4294967040  ;;  %s280_s16 = sand.u32 1, %s1301_s9   ;;  %s862_s17 = sshll.u32 %s271_s20, 7 }
  0x78   : > { %s281_s28 = scalar_lea.sflag [#allocation9], %s280_s16  ;;  %s1447_s14 = scalar_lea.vmem [#allocation8], %s862_s17 }
  0x79   : > { %1200 = dma.done.wait (%p1542_p12), %s281_s28, 2048  }
  0x7a   : > { %1202 = vsyncadd (%p1542_p12), %s281_s28, 4294965248  ;;  %p1543_p13 = scmp.eq.s32.totalorder %s1301_s9, 0 }
  0x7c   : > { %1204 = dma.done.wait (%p1543_p13), [#allocation9], 2048   ;;  %p1544_p9 = pmov %p1543_p13 }
  0x7d   : > { %p1545_p10 = scmp.ne.s32.totalorder %s1301_s9, 0 }
  0x7e   : > { %1206 = vsyncadd (%p1544_p9), [#allocation9], 4294965248  ;;  %v1235_v0 = vmov (!%p1545_p10), 0.0  }
  0x7f   : > { %323 = sbr.rel (%p1545_p10) target bundleno = 134 (0x86), region = 60  ;;  %324 = vst [vmem:[#allocation2] sm:$0xff] (!%p1545_p10), %v1235_v0 }
  0x86 PF: > { %v1011_v1 = vld [vmem:[%s1447_s14 + $0x40] sm:$0xff]   ;;  %v1013_v3 = vld [vmem:[%s1447_s14 + $0x48] sm:$0xff]   ;;  %v1015_v5 = vld [vmem:[%s1447_s14 + $0x50] sm:$0xff]   ;;  %p881_p11 = scmp.ne.s32.totalorder %s1301_s9, 2 }
  0x87   : > { %v1012_v2 = vld [vmem:[%s1447_s14] sm:$0xff]   ;;  %911 = vmatprep.subr.bf16.mxu0 %v1011_v1  ;;  %v1014_v4 = vld [vmem:[%s1447_s14 + $0x8] sm:$0xff]   ;;  %v1016_v6 = vld [vmem:[%s1447_s14 + $0x10] sm:$0xff]   ;;  %v1236_v30 = vmov (!%p881_p11), 0   ;;  %v533_v51 = vlaneseq (!%p881_p11)  ;;  %s1487_s24 = sld [smem:[#allocation4]] (!%p881_p11)  ;;  %s1489_s27 = sld [smem:[#allocation4 + $0x1]] (!%p881_p11) }
  0x88   : > { %912 = vmatpush3.bf16.msra.mxu0 %v1012_v2  ;;  %v1017_v7 = vld [vmem:[%s1447_s14 + $0x58] sm:$0xff]   ;;  %v1019_v9 = vld [vmem:[%s1447_s14 + $0x60] sm:$0xff]   ;;  %v1021_v11 = vld [vmem:[%s1447_s14 + $0x68] sm:$0xff]   ;;  %1027 = vset.pattern.permute.xlu1 (!%p881_p11), %v1236_v30  ;;  %s1491_s26 = sld [smem:[#allocation4 + $0x2]] (!%p881_p11)  ;;  %vm700_vm9 = vcmask (!%p881_p11), 7168  }
  0x89   : > { %913 = vmatprep.subr.bf16.mxu0 %v1013_v3  ;;  %v1018_v8 = vld [vmem:[%s1447_s14 + $0x18] sm:$0xff]   ;;  %v1020_v10 = vld [vmem:[%s1447_s14 + $0x20] sm:$0xff]   ;;  %v1022_v14 = vld [vmem:[%s1447_s14 + $0x28] sm:$0xff]   ;;  %1028 = vset.pattern.permute.xlu0 (!%p881_p11), %v1236_v30  ;;  %v534_v52 = vshrl.u32 (!%p881_p11), %v533_v51, 7  ;;  %v665_v56 = vand.u32 (!%p881_p11), 127, %v533_v51 }
  0x8a   : > { %v327_v12 = vld [vmem:[%s1440_s22 + $0x8] sm:$0xff]  ;;  %v1023_v15 = vld [vmem:[%s1447_s14 + $0x70] sm:$0xff]  }
  0x8b   : > { %v329_v13 = vpack.c.bf16 %v327_v12, %v327_v12  ;;  %v1024_v16 = vld [vmem:[%s1447_s14 + $0x30] sm:$0xff]   ;;  %v1025_v17 = vld [vmem:[%s1447_s14 + $0x78] sm:$0xff]   ;;  %v1029_v28 = vld [vmem:[#allocation10 + $0x4] ss:$8 sps:$4 sm:$0xff] (!%p881_p11)   ;;  %v535_v53 = vsub.s32 (!%p881_p11), 0, %v534_v52  ;;  %v539_v55 = vsub.s32 (!%p881_p11), 1, %v534_v52 }
  0x8c   : > { %914 = vmatpush3.bf16.msra.mxu0 %v1014_v4  ;;  %v1026_v18 = vld [vmem:[%s1447_s14 + $0x38] sm:$0xff]   ;;  %v326_v19 = vld [vmem:[%s1440_s22] sm:$0xff]  ;;  %vm675_vm0 = vcmp.lt.s32.totalorder (!%p881_p11), %v665_v56, 10  ;;  %vm719_vm1 = vcmp.lt.s32.totalorder (!%p881_p11), %v665_v56, 7  ;;  %v1237_v12 = vmov (!%p881_p11), 0.0  }
  0x8d   : > { %915 = vmatprep.subr.bf16.mxu0 %v1015_v5  ;;  %490 = vmatprep.mubr.bf16.mxu0 %v329_v13  ;;  %v328_v20 = vpack.c.bf16 %v326_v19, %v326_v19  ;;  %v325_v22 = vld [vmem:[#allocation2] sm:$0xff]  ;;  %v1031_v29 = vld [vmem:[#allocation10] ss:$8 sps:$4 sm:$0xff] (!%p881_p11)   ;;  %v1035_v33 = vld [vmem:[#allocation10 + $0x24] ss:$8 sps:$4 sm:$0xff] (!%p881_p11)   ;;  %v694_v19 = vstv (!%p881_p11), %s1489_s27  ;;  %s711_s29 = ssub.s32 (!%p881_p11), %s1489_s27, %s1487_s24 }
  0x8e   : > { %v1032_v31 = vld [vmem:[#allocation10 + $0x14] ss:$8 sps:$4 sm:$0xff] (!%p881_p11)   ;;  %v1034_v32 = vld [vmem:[#allocation10 + $0x10] ss:$8 sps:$4 sm:$0xff] (!%p881_p11)   ;;  %v1037_v34 = vld [vmem:[#allocation10 + $0x20] ss:$8 sps:$4 sm:$0xff] (!%p881_p11)   ;;  %vm695_vm4 = vcmp.lt.s32.totalorder (!%p881_p11), %v534_v52, %v694_v19  ;;  %vm737_vm6 = vcmp.ge.s32.totalorder (!%p881_p11), %v534_v52, %v694_v19  ;;  %s712_s19 = scvt.s32.f32 (!%p881_p11), %s711_s29  ;;  %s754_s20 = ssub.s32 (!%p881_p11), %s1491_s26, %s1489_s27 }
  0x8f   : > { %v1038_v35 = vld [vmem:[#allocation10 + $0x34] ss:$8 sps:$4 sm:$0xff] (!%p881_p11)   ;;  %v1040_v36 = vld [vmem:[#allocation10 + $0x30] ss:$8 sps:$4 sm:$0xff] (!%p881_p11)   ;;  %v1041_v37 = vld [vmem:[#allocation10 + $0x44] ss:$8 sps:$4 sm:$0xff] (!%p881_p11)   ;;  %s755_s13 = scvt.s32.f32 (!%p881_p11), %s754_s20 }
  0x90   : > { %916 = vmatpush3.bf16.msra.mxu0 %v1016_v6  ;;  %v1043_v38 = vld [vmem:[#allocation10 + $0x40] ss:$8 sps:$4 sm:$0xff] (!%p881_p11)   ;;  %v1044_v39 = vld [vmem:[#allocation10 + $0x54] ss:$8 sps:$4 sm:$0xff] (!%p881_p11)   ;;  %v1046_v40 = vld [vmem:[#allocation10 + $0x50] ss:$8 sps:$4 sm:$0xff] (!%p881_p11)  }
  0x91   : > { %917 = vmatprep.subr.bf16.mxu0 %v1017_v7  ;;  %v882_v42 = vld [vmem:[%s1529_s3] ss:$0 sm:$0xff] (!%p881_p11)  ;;  %v1047_v43 = vld [vmem:[#allocation10 + $0x64] ss:$8 sps:$4 sm:$0xff] (!%p881_p11)   ;;  %v1049_v45 = vld [vmem:[#allocation10 + $0x60] ss:$8 sps:$4 sm:$0xff] (!%p881_p11)  }
  0x92   : > { %v1050_v46 = vld [vmem:[#allocation10 + $0x74] ss:$8 sps:$4 sm:$0xff] (!%p881_p11)   ;;  %v1052_v48 = vld [vmem:[#allocation10 + $0x70] ss:$8 sps:$4 sm:$0xff] (!%p881_p11)  }
  0x93   : > { %v668_v50 = vld [vmem:[%s1532_s6] sm:$0xff] (!%p881_p11) }
  0x94   : > { %918 = vmatpush3.bf16.msra.mxu0 %v1018_v8  ;;  %670 = vperm.xlu1 (!%p881_p11), %1027, %v668_v50   ;;  %v531_v54 = vld [vmem:[%s1531_s5] sm:$0x3] (!%p881_p11) }
  0x95   : > { %919 = vmatprep.subr.bf16.mxu0 %v1019_v9  ;;  %v536_v57 = vrot.slane (!%p881_p11), %v531_v54, %v535_v53  ;;  %v540_v58 = vrot.slane (!%p881_p11), %v531_v54, %v539_v55 }
  0x98   : > { %920 = vmatpush3.bf16.msra.mxu0 %v1020_v10 }
  0x99   : > { %921 = vmatprep.subr.bf16.mxu0 %v1021_v11 }
  0x9c   : > { %922 = vmatpush3.bf16.msra.mxu0 %v1022_v14 }
  0x9d   : > { %923 = vmatprep.subr.bf16.mxu0 %v1023_v15 }
  0xa0   : > { %924 = vmatpush3.bf16.msra.mxu0 %v1024_v16 }
  0xa1   : > { %925 = vmatprep.subr.bf16.mxu0 %v1025_v17 }
  0xa4   : > { %926 = vmatpush3.bf16.msra.mxu0 %v1026_v18  ;;  %v692_v18 = vstv (!%p881_p11), %s1487_s24 }
  0xa5   : > { %623 = vmatprep.subr.bf16.mxu0 (!%p881_p11), %v1029_v28  ;;  %vm693_vm3 = vcmp.ge.s32.totalorder (!%p881_p11), %v534_v52, %v692_v18 }
  0xa6   : > { %vm696_vm5 = vmand (!%p881_p11), %vm693_vm3, %vm695_vm4 }
  0xa7   : > { %491 = vmatmul.mubr.bf16.vlgmr.msra.gmra.mrb[0].mxu0 %v328_v20  ;;  %v738_v20 = vstv (!%p881_p11), %s1491_s26 }
  0xa8   : > { %655 = vmatprep.mubr.bf16.mxu0 (!%p881_p11), %v1236_v30  ;;  %624 = vmatpush1.bf16.msra.mxu0 (!%p881_p11), %v1031_v29  ;;  %vm739_vm7 = vcmp.lt.s32.totalorder (!%p881_p11), %v534_v52, %v738_v20 }
  0xa9   : > { %625 = vmatprep.subr.bf16.mxu0 (!%p881_p11), %v1032_v31  ;;  %vm740_vm8 = vmand (!%p881_p11), %vm737_vm6, %vm739_vm7 }
  0xaa   : > { %v904_v30 = vsel (!%p881_p11), %vm740_vm8, 1.0, %v1237_v12 }
  0xac   : > { %626 = vmatpush1.bf16.msra.mxu0 (!%p881_p11), %v1034_v32 }
  0xad   : > { %627 = vmatprep.subr.bf16.mxu0 (!%p881_p11), %v1035_v33 }
  0xb0   : > { %628 = vmatpush1.bf16.msra.mxu0 (!%p881_p11), %v1037_v34 }
  0xb1   : > { %629 = vmatprep.subr.bf16.mxu0 (!%p881_p11), %v1038_v35  ;;  %v713_v35 = vstv (!%p881_p11), %s712_s19 }
  0xb4   : > { %630 = vmatpush1.bf16.msra.mxu0 (!%p881_p11), %v1040_v36 }
  0xb5   : > { %631 = vmatprep.subr.bf16.mxu0 (!%p881_p11), %v1041_v37 }
  0xb8   : > { %632 = vmatpush1.bf16.msra.mxu0 (!%p881_p11), %v1043_v38  ;;  %v756_v38 = vstv (!%p881_p11), %s755_s13 }
  0xb9   : > { %633 = vmatprep.subr.bf16.mxu0 (!%p881_p11), %v1044_v39 }
  0xbc   : > { %634 = vmatpush1.bf16.msra.mxu0 (!%p881_p11), %v1046_v40 }
  0xbd   : > { %635 = vmatprep.subr.bf16.mxu0 (!%p881_p11), %v1047_v43 }
  0xc0   : > { %636 = vmatpush1.bf16.msra.mxu0 (!%p881_p11), %v1049_v45 }
  0xc1   : > { %637 = vmatprep.subr.bf16.mxu0 (!%p881_p11), %v1050_v46 }
  0xc4   : > { %638 = vmatpush1.bf16.msra.mxu0 (!%p881_p11), %v1052_v48 }
 0x113   : > { %v671_v9 = vpop.permute.xlu1 (!%p881_p11), %670 }
 0x114   : > { %vm672_vm2 = vcmp.eq.s32.totalorder (!%p881_p11), %v665_v56, %v671_v9 }
 0x115   : > { %v899_v13 = vsel (!%p881_p11), %vm672_vm2, 1.0, %v1237_v12 }
 0x17a   : > { %v927_v21 = vpop.f32.mrb[0].mxu0  ;;  %503 = sbr.rel (%p881_p11) target bundleno = 1142 (0x476), region = 64 }
 0x17b   : > { %v928_v23 = vpop.f32.mrb[1].mxu0 }
 0x17c   : > { %v929_v24 = vadd.f32 %v928_v23, %v927_v21  ;;  %v930_v25 = vpop.f32.mrb[2].mxu0 }
 0x17d   : > { %v931_v26 = vpop.f32.mrb[3].mxu0 }
 0x17e   : > { %v498_v27 = vadd.f32 %v929_v24, %v325_v22  ;;  %v901_v24 = vsel (!%p881_p11), %vm696_vm5, 1.0, %v1237_v12 }
 0x180   : > { %499 = vst [vmem:[#allocation2] sm:$0xff] %v498_v27 }
 0x187   : > { %v504_v41 = vld [vmem:[#allocation2] sm:$0xff] }
 0x188   : > { %v512_v44 = vadd.f32 %v882_v42, %v504_v41 }
 0x18a   : > { %v513_v47 = vmax.f32 %v512_v44, 0.0 }
 0x18c   : > { %v514_v49 = vpack.c.bf16 %v513_v47, %v513_v47 }
 0x18e   : > { %656 = vmatmul.mubr.bf16.vlgmr.msra.gmra.mrb[0].mxu0 %v514_v49 }
 0x261   : > { %v657_v59 = vpop.f32.mrb[0].mxu0 }
 0x262   : > { %v658_v60 = vadd.f32 %v657_v59, %v536_v57  ;;  %v659_v61 = vpop.f32.mrb[1].mxu0 }
 0x263   : > { %v661_v62 = vpop.f32.mrb[2].mxu0  ;;  %v660_v63 = vadd.f32 %v659_v61, %v540_v58 }
 0x264   : > { %v662_v0 = vpop.f32.mrb[3].mxu0  ;;  %v676_v1 = vsel %vm675_vm0, %v658_v60, -1e+30 }
 0x265   : > { %677 = vmax.xlane.f32.xlu0 %v676_v1  ;;  %v720_v2 = vsel %vm719_vm1, %v660_v63, -1e+30 }
 0x269   : > { %721 = vmax.xlane.f32.xlu0 %v720_v2 }
 0x2f2   : > { %v678_v3 = vpop.xlane.xlu0 %677 }
 0x2f3   : > { %v679_v4 = vsub.f32 %v676_v1, %v678_v3 }
 0x2f5   : > { %v680_v5 = vmul.f32 1.442695, %v679_v4  ;;  %v684_v14 = vmul.f32 %v899_v13, %v679_v4 }
 0x2f6   : > { %v722_v6 = vpop.xlane.xlu0 %721 }
 0x2f7   : > { %1053 = vpow2.f32 %v680_v5  ;;  %v723_v7 = vsub.f32 %v720_v2, %v722_v6 }
 0x2f9   : > { %v724_v8 = vmul.f32 1.442695, %v723_v7  ;;  %v728_v15 = vmul.f32 %v899_v13, %v723_v7 }
 0x2fb   : > { %1055 = vpow2.f32 %v724_v8 }
 0x301   : > { %v1054_v10 = vpop.eup %1053 }
 0x302   : > { %682 = vadd.xlane.f32.xlu1 %v1054_v10 }
 0x305   : > { %v1056_v11 = vpop.eup %1055 }
 0x306   : > { %726 = vadd.xlane.f32.xlu0 %v1056_v11 }
 0x30a   : > { %685 = vadd.xlane.f32.xlu0 %v684_v14 }
 0x30e   : > { %729 = vadd.xlane.f32.xlu0 %v728_v15 }
 0x38f   : > { %v683_v16 = vpop.xlane.xlu1 %682 }
 0x390   : > { %1057 = vlog2.f32 %v683_v16 }
 0x393   : > { %v727_v17 = vpop.xlane.xlu0 %726 }
 0x394   : > { %1059 = vlog2.f32 %v727_v17 }
 0x395   : > { %1061 = vrcp.f32 %v713_v35 }
 0x396   : > { %1063 = vrcp.f32 %v756_v38 }
 0x397   : > { %v686_v22 = vpop.xlane.xlu0 %685 }
 0x39a   : > { %v1058_v21 = vpop.eup %1057 }
 0x39b   : > { %v688_v23 = vmul.f32 0.6931472, %v1058_v21  ;;  %v730_v29 = vpop.xlane.xlu0 %729 }
 0x39d   : > { %v689_v25 = vsub.f32 %v688_v23, %v686_v22 }
 0x39e   : > { %v1060_v26 = vpop.eup %1059 }
 0x39f   : > { %v732_v27 = vmul.f32 0.6931472, %v1060_v26  ;;  %v699_v28 = vmul.f32 %v901_v24, %v689_v25  ;;  %v1062_v47 = vpop.eup %1061 }
 0x3a0   : > { %v1064_v51 = vpop.eup %1063 }
 0x3a1   : > { %v733_v31 = vsub.f32 %v732_v27, %v730_v29  ;;  %v701_v32 = vsel %vm700_vm9, %v699_v28, 0.0 }
 0x3a2   : > { %702 = vadd.xlane.f32.xlu0 %v701_v32 }
 0x3a3   : > { %v743_v33 = vmul.f32 %v904_v30, %v733_v31 }
 0x3a5   : > { %v744_v34 = vsel %vm700_vm9, %v743_v33, 0.0 }
 0x3a6   : > { %745 = vadd.xlane.f32.xlu0 %v744_v34 }
 0x42f   : > { %v703_v36 = vpop.xlane.xlu0 %702 }
 0x430   : > { %v704_v37 = vrot.slane %v703_v36, 4 }
 0x432   : > { %v705_v39 = vadd.f32 %v704_v37, %v703_v36 }
 0x433   : > { %v746_v40 = vpop.xlane.xlu0 %745 }
 0x434   : > { %v706_v41 = vrot.slane %v705_v39, 2  ;;  %v747_v42 = vrot.slane %v746_v40, 4 }
 0x436   : > { %v748_v43 = vadd.f32 %v747_v42, %v746_v40  ;;  %v707_v44 = vadd.f32 %v706_v41, %v705_v39 }
 0x438   : > { %v749_v45 = vrot.slane %v748_v43, 2  ;;  %v708_v46 = vrot.slane %v707_v44, 1 }
 0x43a   : > { %v750_v48 = vadd.f32 %v749_v45, %v748_v43  ;;  %v709_v49 = vadd.f32 %v708_v46, %v707_v44 }
 0x43c   : > { %933 = vpush %v709_v49  ;;  %v751_v50 = vrot.slane %v750_v48, 1 }
 0x43d   : > { %935 = vpush %v1062_v47 }
 0x43e   : > { %v752_v52 = vadd.f32 %v751_v50, %v750_v48 }
 0x440   : > { %937 = vpush %v752_v52 }
 0x441   : > { %939 = vpush %v1064_v51 }
 0x46d   : > { %s934_s18 = spop %933 }
 0x46e   : > { %s936_s22 = spop %935 }
 0x46f   : > { %s716_s16 = smul.f32 %s936_s22, %s934_s18 }
 0x471   : > { %718 = sst [smem:[#allocation11]] %s716_s16  ;;  %s938_s17 = spop %937 }
 0x472   : > { %s940_s28 = spop %939 }
 0x473   : > { %s759_s14 = smul.f32 %s940_s28, %s938_s17 }
 0x475   : > { %761 = sst [smem:[#allocation11 + $0x1]] %s759_s14 }
 0x476 PF: > { %p967_p1 = scmp.eq.s32.totalorder %s1301_s9, 2  ;;  %s1165_s21 = scalar_lea.hbm %s1533_s7, 16 }
 0x477   : > { %p1166_p3 = scmp.ne.s32.totalorder %s1533_s7, %s1165_s21  ;;  %p1171_p4 = scmp.lt.u32.totalorder %s1165_s21, %s1533_s7 }
 0x479   : > { %p1167_p5 = pnand %p1166_p3, %p967_p1 }
 0x47b   : > { %p1168_p7 = pneg %p1167_p5 }
 0x47d   : > { %p1173_p8 = pnand %p1171_p4, %p1168_p7 }
 0x47f   : > { %1176 = shalt.err (!%p1173_p8)
}
 0x480   : > { %s1238_s27 = smov [#allocation11]  }
 0x481   : > { %950 = dma.smem_to_hbm (%p967_p1), %s1238_s27, 16, %s1533_s7, [#allocation7]  }
 0x482   : > { %1208 = dma.done.wait (%p967_p1), [#allocation7], 16  }
 0x483   : > { %1210 = vsyncadd (%p967_p1), [#allocation7], 4294967280 }
 0x484   : > { %775 = sfence }
 0x485 PF: > { %p27_p0 = scmp.ge.s32.totalorder %s1327_s15, 5   ;;  %s1546_s29 = smov %s1217_s0 }
 0x486   : > { %s1547_s0 = smov %s1221_s30  ;;  %s1548_s30 = smov %s1353_s12 }
 0x487   : > { %s1549_s8 = smov %s1327_s15  ;;  %29 = sbr.rel (!%p27_p0) target bundleno = 21 (0x15), region = 108 }
 0x48e   :  { %781 = vsyncpa [#allocation6], 1 }
 0x48f   :  { %783 = vsyncpa [#allocation6 + $0x1], 1 }
 0x490   :  { %784 = vsyncpa [#allocation9], 1 }
 0x491   :  { %786 = vsyncpa [#allocation9 + $0x1], 1 }
 0x492   :  { %787 = vsyncpa [#allocation7], 1 }
 0x493   :  { %789 = vsyncpa [#allocation7 + $0x1], 1 }

</bundles_post_ra>
